<compile_context>
chip_gen: v7x
topology: tpu7x:2x2x1
jax: 0.10.0
libtpu: 0.0.40
codegen_flags: <defaults>
</compile_context>

<pallas_src>
import jax
import jax.numpy as jnp
from jax.experimental import pallas as pl
from jax.experimental.pallas import tpu as pltpu

_LANES = 128   # examples per grid tile along the lane axis


def _logreg_kernel(w_ref, b_ref, o_ref):
    # w_ref: (n_feat, TB) f32 VMEM -- gathered weight entries, one column per example
    # b_ref: (1,)         f32 SMEM -- bias
    # o_ref: (1, TB)      f32 VMEM -- sigmoid(z), lane-dense unmasked store
    z = jnp.sum(w_ref[...], axis=0, keepdims=True) + b_ref[0]     # (1, TB)
    o_ref[...] = 1.0 / (1.0 + jnp.exp(-z))                        # exact sigmoid


def _logreg_pallas(w_sel, bias):
    """w_sel: (n_feat, B_pad) f32 with B_pad % 128 == 0; bias: (1,) f32 -> (1, B_pad)."""
    n_feat, b_pad = w_sel.shape
    grid = (b_pad // _LANES,)
    return pl.pallas_call(
        _logreg_kernel,
        out_shape=jax.ShapeDtypeStruct((1, b_pad), jnp.float32),
        grid=grid,
        in_specs=[
            pl.BlockSpec((n_feat, _LANES), lambda j: (0, j)),          # gathered weights
            pl.BlockSpec(memory_space=pltpu.MemorySpace.SMEM),         # bias scalar
        ],
        out_specs=pl.BlockSpec((1, _LANES), lambda j: (0, j)),
        compiler_params=pltpu.CompilerParams(dimension_semantics=("parallel",)),
    )(w_sel, bias)


@jax.jit
def _forward(idx, weight, bias, offsets, sizes):
    """idx: (B, n_feat) int32 category indices -> (B,) f32 = sigmoid(w . onehot(idx) + b)."""
    B, n_feat = idx.shape
    # one_hot semantics: out-of-range indices contribute nothing (no unchecked OOB reads)
    valid = (idx >= 0) & (idx < sizes[None, :])
    flat = jnp.clip(idx, 0, sizes[None, :] - 1) + offsets[None, :]
    w_sel = jnp.where(valid, jnp.take(weight, flat, axis=0), 0.0)     # (B, n_feat) gather
    # examples along lanes (pad B up to a multiple of 128), features along sublanes
    b_pad = ((B + _LANES - 1) // _LANES) * _LANES
    w_blk = jnp.zeros((n_feat, b_pad), jnp.float32).at[:, :B].set(w_sel.T)
    out = _logreg_pallas(w_blk, bias)                                 # (1, b_pad)
    return out[0, :B]                                                 # (B,)


class LogisticRegressionPallas:
    def __init__(self, feature_sizes, key):
        self.feature_sizes = list(feature_sizes)
        F = sum(self.feature_sizes)
        k_w, k_b = jax.random.split(key)
        bound = 1.0 / (F ** 0.5)   # nn.Linear default init: U(-1/sqrt(F), 1/sqrt(F))
        # PyTorch weight is (1, F); keep it flat as (F,). It stays in HBM; only the
        # touched entries are gathered per call, so F can be CTR-vocab sized.
        self.weight = jax.random.uniform(
            k_w, (F,), minval=-bound, maxval=bound, dtype=jnp.float32)
        self.bias = jax.random.uniform(
            k_b, (1,), minval=-bound, maxval=bound, dtype=jnp.float32)
        offs, acc = [], 0
        for sz in self.feature_sizes:
            offs.append(acc)
            acc += sz
        self.offsets = jnp.asarray(offs, dtype=jnp.int32)
        self.sizes = jnp.asarray(self.feature_sizes, dtype=jnp.int32)

    def __call__(self, x_indices):
        # x_indices: list (len n_feat) of scalar or (B,) integer category indices.
        cols = [jnp.atleast_1d(jnp.asarray(x_i, dtype=jnp.int32)) for x_i in x_indices]
        idx = jnp.stack(cols, axis=-1)        # (B, n_feat)
        return _forward(idx, self.weight, self.bias, self.offsets, self.sizes)


if __name__ == "__main__":
    key = jax.random.PRNGKey(0)
    feature_sizes = [16, 32, 64, 16]          # F = 128
    k_model, k_idx = jax.random.split(key)
    model = LogisticRegressionPallas(feature_sizes, k_model)

    # ---- batch-1 path (matches the PyTorch module: list of scalar indices) ----
    idx_keys = jax.random.split(k_idx, len(feature_sizes))
    x_scalar = [jax.random.randint(k, (), 0, sz) for k, sz in zip(idx_keys, feature_sizes)]
    out1 = jax.block_until_ready(model(x_scalar))
    oh = [jax.nn.one_hot(jnp.asarray(x_i, jnp.int32), sz, dtype=jnp.float32).reshape(-1)
          for x_i, sz in zip(x_scalar, feature_sizes)]
    x_flat = jnp.concatenate(oh, axis=0)
    ref1 = jax.nn.sigmoid(x_flat @ model.weight + model.bias)        # (1,)
    assert out1.shape == (1,)
    assert jnp.allclose(out1, ref1, atol=1e-5), (out1, ref1)

    # ---- small batched path (exercises lane padding + masked OOR handling) ----
    B = 6
    b_keys = jax.random.split(jax.random.PRNGKey(1), len(feature_sizes))
    x_batch = [jax.random.randint(k, (B,), 0, sz) for k, sz in zip(b_keys, feature_sizes)]
    out_b = jax.block_until_ready(model(x_batch))
    oh_b = [jax.nn.one_hot(x_i, sz, dtype=jnp.float32) for x_i, sz in zip(x_batch, feature_sizes)]
    x_flat_b = jnp.concatenate(oh_b, axis=-1)                        # (B, F)
    ref_b = jax.nn.sigmoid(x_flat_b @ model.weight + model.bias[0])  # (B,)
    assert out_b.shape == (B,)
    assert jnp.allclose(out_b, ref_b, atol=1e-5), (out_b, ref_b)

    print("KERNEL_OK")
</pallas_src>

<mosaic_0001>
module attributes {stable_mosaic.version = 11 : i64} {
  func.func @_logreg_kernel(%arg0: i32, %arg1: memref<4x128xf32, #tpu.memory_space<vmem>>, %arg2: memref<1xf32, #tpu.memory_space<smem>>, %arg3: memref<1x128xf32, #tpu.memory_space<vmem>>) attributes {dimension_semantics = [#tpu.dimension_semantics<parallel>], iteration_bounds = array<i64: 1>, scalar_prefetch = 0 : i64, scratch_operands = 0 : i64, tpu.core_type = #tpu.core_type<tc>, window_params = [{transform_indices = @transform_0, window_bounds = array<i64: 4, 128>}, {transform_indices = @transform_1, window_bounds = array<i64: 1>}, {transform_indices = @transform_2, window_bounds = array<i64: 1, 128>}]} {
    %c0 = arith.constant 0 : index
    %c0_0 = arith.constant 0 : index
    %0 = vector.load %arg1[%c0, %c0_0] : memref<4x128xf32, #tpu.memory_space<vmem>>, vector<4x128xf32>
    %cst = arith.constant dense<0.000000e+00> : vector<128xf32>
    %1 = vector.multi_reduction <add>, %0, %cst [0] : vector<4x128xf32> to vector<128xf32>
    %2 = vector.shape_cast %1 : vector<128xf32> to vector<1x128xf32>
    %c0_1 = arith.constant 0 : index
    %3 = memref.load %arg2[%c0_1] : memref<1xf32, #tpu.memory_space<smem>>
    %4 = vector.broadcast %3 : f32 to vector<1x128xf32>
    %5 = arith.addf %2, %4 : vector<1x128xf32>
    %cst_2 = arith.constant 0.000000e+00 : f32
    %6 = vector.broadcast %cst_2 : f32 to vector<1x128xf32>
    %7 = arith.subf %6, %5 : vector<1x128xf32>
    %8 = math.exp %7 : vector<1x128xf32>
    %cst_3 = arith.constant 1.000000e+00 : f32
    %9 = vector.broadcast %cst_3 : f32 to vector<1x128xf32>
    %10 = arith.addf %9, %8 : vector<1x128xf32>
    %cst_4 = arith.constant 1.000000e+00 : f32
    %11 = vector.broadcast %cst_4 : f32 to vector<1x128xf32>
    %12 = arith.divf %11, %10 : vector<1x128xf32>
    %c0_5 = arith.constant 0 : index
    %c0_6 = arith.constant 0 : index
    %13 = vector.load %arg3[%c0_5, %c0_6] : memref<1x128xf32, #tpu.memory_space<vmem>>, vector<1x128xf32>
    tpu.vector_store %arg3[%c0_5, %c0_6], %12 {strides = array<i32>} : memref<1x128xf32, #tpu.memory_space<vmem>>, vector<1x128xf32>,
    return
  }
  func.func @transform_0(%arg0: i32) -> (i32, i32) {
    %c0_i32 = arith.constant 0 : i32
    %c0_i32_0 = arith.constant 0 : i32
    return %c0_i32, %arg0 : i32, i32
  }
  func.func @transform_1(%arg0: i32) -> i32 {
    %c0_i32 = arith.constant 0 : i32
    %c0_i32_0 = arith.constant 0 : i32
    return %c0_i32 : i32
  }
  func.func @transform_2(%arg0: i32) -> (i32, i32) {
    %c0_i32 = arith.constant 0 : i32
    %c0_i32_0 = arith.constant 0 : i32
    return %c0_i32, %arg0 : i32, i32
  }
}

</mosaic_0001>

<bundles_post_ra>
// kernel: _forward.1
= control target key start
LH: loop header
LB: loop body
LE: loop exit
PB: predicated region body
PF: predicated region fallthrough
CT: control target
= control target key end

     0   :  { %vm14_vm0 = vcmask 1043456   ;;  %s109_s0 = inlined_call_operand.vmem [shape: f32[4,128], index: 0, kind: input, shape index: {}]   ;;  %s110_s1 = inlined_call_operand.<no memory space> [shape: f32[1], index: 1, kind: input, shape index: {}]   ;;  %s111_s2 = inlined_call_operand.hbm [shape: f32[1,128], index: 2, kind: output, shape index: {}]  }
   0x1   :  { %v13_v0 = vld [vmem:[%s109_s0] sm:$0xf] }
   0x2   :  { %8 = vsyncpa [#allocation4], 0  ;;  %v15_v1 = vsel %vm14_vm0, %v13_v0, 0.0  ;;  %v23_v7 = vstv %s110_s1  ;;  %s75_s0 = smov [#allocation3]  }
   0x3   :  { %v16_v2 = vrot.slane %v15_v1, 4  ;;  %s38_s13 = sshll.u32 %s75_s0, 4  ;;  %s39_s13 = int_to_ptr.vmem [resolvable:$true] %s38_s13 }
   0x4   :  { %s51_s14 = scalar_lea.vmem %s39_s13, 16  ;;  %s55_s15 = scalar_lea.vmem %s39_s13, 32 }
   0x5   :  { %v17_v3 = vadd.f32 %v16_v2, %v15_v1  ;;  %p52_p0 = scmp.ne.s32.totalorder %s39_s13, %s51_s14  ;;  %p56_p1 = scmp.lt.s32.totalorder %s39_s13, %s39_s13 }
   0x6   :  { %p57_p2 = scmp.lt.s32.totalorder %s55_s15, %s51_s14 }
   0x7   :  { %v18_v4 = vrot.slane %v17_v3, 2 }
   0x8   :  { %p58_p3 = por %p57_p2, %p56_p1 }
   0x9   :  { %v19_v5 = vadd.f32 %v18_v4, %v17_v3 }
   0xa   :  { %p59_p4 = pnand %p58_p3, %p52_p0 }
   0xb   :  { %v20_v6 = vrot.slane %v19_v5, 1 }
   0xd   :  { %v21_v8 = vadd.f32 %v20_v6, %v19_v5 }
   0xf   :  { %v24_v9 = vadd.f32 %v23_v7, %v21_v8 }
  0x11   :  { %v25_v10 = vsub.f32 0.0, %v24_v9 }
  0x13   :  { %v26_v11 = vmul.f32 1.442695, %v25_v10 }
  0x15   :  { %47 = vpow2.f32 %v26_v11 }
  0x1f   :  { %v48_v12 = vpop.eup %47 }
  0x20   :  { %v28_v13 = vadd.f32 1.0, %v48_v12 }
  0x22   :  { %49 = vrcp.f32 %v28_v13 }
  0x2c   :  { %v50_v14 = vpop.eup %49 }
  0x2d   :  { %31 = vst [vmem:[#allocation3] sm:$0x1] %v50_v14 }
  0x2e   :  { %62 = shalt.err (!%p59_p4)
}
  0x2f   :  { %s63_s17 = scalar_lea.hbm %s111_s2, 16 }
  0x30   :  { %p64_p5 = scmp.ne.s32.totalorder %s111_s2, %s63_s17  ;;  %p67_p6 = scmp.lt.u32.totalorder %s63_s17, %s111_s2 }
  0x32   :  { %p69_p7 = pnand %p67_p6, %p64_p5 }
  0x34   :  { %72 = shalt.err (!%p69_p7)
}
  0x35   :  { %41 = dma.vmem_to_hbm [thread:$0]  %s39_s13, 16, %s111_s2, [#allocation4]  }
  0x36   :  { %73 = dma.done.wait [#allocation4], 16  }
  0x37   :  { %74 = vsyncadd [#allocation4], 4294967280 }
  0x38   :  { %45 = vsyncpa [#allocation4], 1 }

</bundles_post_ra>
